<compile_context>
chip_gen: v5e
topology: v5e:2x2
jax: 0.10.0
libtpu: 0.0.40
codegen_flags: <defaults>
</compile_context>

<pallas_src>
import functools

import jax
import jax.numpy as jnp
from jax.experimental import pallas as pl
from jax.experimental.pallas import tpu as pltpu

H = 64        # LSTM hidden size (fixed by the module)
T = 5         # sequence length implied by FC = Linear(64 * 5, output_size)
SUBLANE = 8   # f32 sublane tile
LANE = 128    # lane tile


def lstm_fc_kernel(Tdim, Bp, x_ref, wih_ref, whh_ref, b_ref, wfc_ref, bfc_ref,
                   out_ref, hsig_ref):
    """x_ref: (T*Bp, D) time-major, MXU dtype.  wih: (D,4H), whh: (H,4H),
    wfc: (T*H, Opad) (all MXU dtype; g-gate columns of wih/whh/b pre-scaled by 2).
    b: (1,4H) f32, bfc: (1,Opad) f32.  out: (Bp,Opad) f32.  hsig: (Bp,T*H) f32 scratch."""
    mm_dtype = whh_ref.dtype

    # Prologue: input projection for every timestep in a single MXU push, bias folded
    # in once -- off the serial critical path.
    xg = jnp.dot(x_ref[...], wih_ref[...],
                 preferred_element_type=jnp.float32) + b_ref[...]      # (T*Bp, 4H) f32

    h = jnp.zeros((Bp, H), jnp.float32)
    c = jnp.zeros((Bp, H), jnp.float32)

    for t in range(Tdim):  # static unroll (T = 5); only h @ W_hh is truly sequential
        gates = xg[t * Bp:(t + 1) * Bp, :] + jnp.dot(
            h.astype(mm_dtype), whh_ref[...], preferred_element_type=jnp.float32)
        s = jax.nn.sigmoid(gates)                  # one full-width (Bp, 4H) EUP pass
        i_g = s[:, 0 * H:1 * H]
        f_g = s[:, 1 * H:2 * H]
        g_g = 2.0 * s[:, 2 * H:3 * H] - 1.0        # tanh(g) = 2*sigmoid(2g) - 1
        o_g = s[:, 3 * H:4 * H]
        c = f_g * c + i_g * g_g
        h = o_g * jnp.tanh(c)
        hsig_ref[:, t * H:(t + 1) * H] = jax.nn.sigmoid(h)

    # Epilogue: single (Bp, T*H) @ (T*H, Opad) FC matmul, lane-dense output store.
    out_ref[...] = jnp.dot(hsig_ref[...].astype(mm_dtype), wfc_ref[...],
                           preferred_element_type=jnp.float32) + bfc_ref[...]


def prepare_params(w_ih, w_hh, b_ih, b_hh, w_fc, b_fc, *, mxu_dtype=jnp.bfloat16):
    """One-time weight packing (PyTorch layout in -> kernel layout out)."""
    G = 4 * H
    O, TH = w_fc.shape
    o_pad = ((O + LANE - 1) // LANE) * LANE

    # [i, f, g(x2), o]: pre-scale g columns so one sigmoid pass covers all four gates.
    gate_scale = jnp.concatenate(
        [jnp.ones((1, 2 * H), jnp.float32),
         jnp.full((1, H), 2.0, jnp.float32),
         jnp.ones((1, H), jnp.float32)], axis=1)

    wih_t = jnp.transpose(w_ih).astype(jnp.float32) * gate_scale        # (D, 4H)
    whh_t = jnp.transpose(w_hh).astype(jnp.float32) * gate_scale        # (H, 4H)
    b = (b_ih + b_hh).reshape(1, G).astype(jnp.float32) * gate_scale    # (1, 4H)

    wfc_t = jnp.transpose(w_fc).astype(jnp.float32)                     # (T*H, O)
    wfc_pad = jnp.zeros((TH, o_pad), jnp.float32).at[:, :O].set(wfc_t)
    bfc_pad = jnp.zeros((1, o_pad), jnp.float32).at[0, :O].set(b_fc.astype(jnp.float32))

    return {
        "wih": wih_t.astype(mxu_dtype),
        "whh": whh_t.astype(mxu_dtype),
        "b": b,
        "wfc": wfc_pad.astype(mxu_dtype),
        "bfc": bfc_pad,
        "out_dim": O,
        "mxu_dtype": mxu_dtype,
    }


def lstm_forward(x, params):
    """x: (B, T, D) float32 (batch_first, PyTorch semantics).  Returns (B, O) float32."""
    B, Tdim, D = x.shape
    O = params["out_dim"]
    o_pad = params["wfc"].shape[1]
    mxu_dtype = params["mxu_dtype"]

    bp = ((B + SUBLANE - 1) // SUBLANE) * SUBLANE
    # time-major, batch padded to a full sublane tile, flattened to (T*Bp, D)
    x_tm = jnp.transpose(x, (1, 0, 2))
    x_tm = jnp.pad(x_tm, ((0, 0), (0, bp - B), (0, 0)))
    x_tm = x_tm.reshape(Tdim * bp, D).astype(mxu_dtype)

    vmem = pl.BlockSpec(memory_space=pltpu.MemorySpace.VMEM)
    # TODO(synk): if batch ever grows, add a grid over B with
    # dimension_semantics=("parallel",) so v7x can shard the batch across TensorCores.
    out = pl.pallas_call(
        functools.partial(lstm_fc_kernel, Tdim, bp),
        out_shape=jax.ShapeDtypeStruct((bp, o_pad), jnp.float32),
        in_specs=[vmem] * 6,
        out_specs=vmem,
        scratch_shapes=[pltpu.VMEM((bp, Tdim * H), jnp.float32)],
    )(x_tm, params["wih"], params["whh"], params["b"], params["wfc"], params["bfc"])
    return out[:B, :O]


def lstm_reference(x, w_ih, w_hh, b_ih, b_hh, w_fc, b_fc):
    """Pure-JAX f32 reference mirroring the PyTorch module."""
    B, Tdim, D = x.shape
    h = jnp.zeros((B, H), jnp.float32)
    c = jnp.zeros((B, H), jnp.float32)
    hs = []
    for t in range(Tdim):
        gates = x[:, t, :] @ w_ih.T + b_ih + h @ w_hh.T + b_hh
        i_g = jax.nn.sigmoid(gates[:, 0 * H:1 * H])
        f_g = jax.nn.sigmoid(gates[:, 1 * H:2 * H])
        g_g = jnp.tanh(gates[:, 2 * H:3 * H])
        o_g = jax.nn.sigmoid(gates[:, 3 * H:4 * H])
        c = f_g * c + i_g * g_g
        h = o_g * jnp.tanh(c)
        hs.append(h)
    flat = jax.nn.sigmoid(jnp.concatenate(hs, axis=-1))   # (B, T*H) == out.view(B, -1)
    return flat @ w_fc.T + b_fc


if __name__ == "__main__":
    B, D, O = 4, 16, 10  # batch, input_size, output_size

    key = jax.random.PRNGKey(0)
    ks = jax.random.split(key, 7)
    s = 1.0 / jnp.sqrt(H)  # PyTorch LSTM/Linear-style uniform init scale
    x = jax.random.normal(ks[0], (B, T, D), jnp.float32)
    w_ih = jax.random.uniform(ks[1], (4 * H, D), jnp.float32, -s, s)
    w_hh = jax.random.uniform(ks[2], (4 * H, H), jnp.float32, -s, s)
    b_ih = jax.random.uniform(ks[3], (4 * H,), jnp.float32, -s, s)
    b_hh = jax.random.uniform(ks[4], (4 * H,), jnp.float32, -s, s)
    sf = 1.0 / jnp.sqrt(T * H)
    w_fc = jax.random.uniform(ks[5], (O, T * H), jnp.float32, -sf, sf)
    b_fc = jax.random.uniform(ks[6], (O,), jnp.float32, -sf, sf)

    ref = lstm_reference(x, w_ih, w_hh, b_ih, b_hh, w_fc, b_fc)

    # Structural check: f32 MXU path must match the reference tightly.
    params_f32 = prepare_params(w_ih, w_hh, b_ih, b_hh, w_fc, b_fc,
                                mxu_dtype=jnp.float32)
    out_f32 = jax.block_until_ready(lstm_forward(x, params_f32))
    assert out_f32.shape == (B, O)
    assert jnp.allclose(out_f32, ref, atol=1e-4, rtol=1e-4), "f32 mismatch vs reference"

    # Perf path: bf16 MXU operands (v6e/v7x-friendly), f32 accumulation / elementwise.
    params_bf16 = prepare_params(w_ih, w_hh, b_ih, b_hh, w_fc, b_fc,
                                 mxu_dtype=jnp.bfloat16)
    out_bf16 = jax.block_until_ready(lstm_forward(x, params_bf16))
    assert out_bf16.shape == (B, O)
    assert jnp.allclose(out_bf16, ref, atol=3e-2, rtol=3e-2), "bf16 mismatch vs reference"

    print("KERNEL_OK")
</pallas_src>

<mosaic_0001>
module attributes {stable_mosaic.version = 11 : i64} {
  func.func @lstm_fc_kernel(%arg0: memref<40x16xf32, #tpu.memory_space<vmem>>, %arg1: memref<16x256xf32, #tpu.memory_space<vmem>>, %arg2: memref<64x256xf32, #tpu.memory_space<vmem>>, %arg3: memref<1x256xf32, #tpu.memory_space<vmem>>, %arg4: memref<320x128xf32, #tpu.memory_space<vmem>>, %arg5: memref<1x128xf32, #tpu.memory_space<vmem>>, %arg6: memref<8x128xf32, #tpu.memory_space<vmem>>, %arg7: memref<8x320xf32, #tpu.memory_space<vmem>>) attributes {dimension_semantics = [], scalar_prefetch = 0 : i64, scratch_operands = 1 : i64, tpu.core_type = #tpu.core_type<tc>} {
    %c0 = arith.constant 0 : index
    %c0_0 = arith.constant 0 : index
    %0 = vector.load %arg0[%c0, %c0_0] : memref<40x16xf32, #tpu.memory_space<vmem>>, vector<40x16xf32>
    %c0_1 = arith.constant 0 : index
    %c0_2 = arith.constant 0 : index
    %1 = vector.load %arg1[%c0_1, %c0_2] : memref<16x256xf32, #tpu.memory_space<vmem>>, vector<16x256xf32>
    %cst = arith.constant dense<0.000000e+00> : vector<40x256xf32>
    %2 = tpu.matmul %0, %1, %cst {dimension_numbers = #tpu.dot_dimension_numbers<[1], [0], [0], [1], [0, 0, 1, 1], [], []>} : vector<40x16xf32>, vector<16x256xf32>, vector<40x256xf32> -> vector<40x256xf32>
    %c0_3 = arith.constant 0 : index
    %c0_4 = arith.constant 0 : index
    %3 = vector.load %arg3[%c0_3, %c0_4] : memref<1x256xf32, #tpu.memory_space<vmem>>, vector<1x256xf32>
    %4 = vector.broadcast %3 : vector<1x256xf32> to vector<40x256xf32>
    %5 = arith.addf %2, %4 : vector<40x256xf32>
    %cst_5 = arith.constant 0.000000e+00 : f32
    %6 = vector.broadcast %cst_5 : f32 to vector<8x64xf32>
    %cst_6 = arith.constant 0.000000e+00 : f32
    %7 = vector.broadcast %cst_6 : f32 to vector<8x64xf32>
    %8 = vector.extract_strided_slice %5 {offsets = [0, 0], sizes = [8, 256], strides = [1, 1]} : vector<40x256xf32> to vector<8x256xf32>
    %c0_7 = arith.constant 0 : index
    %c0_8 = arith.constant 0 : index
    %9 = vector.load %arg2[%c0_7, %c0_8] : memref<64x256xf32, #tpu.memory_space<vmem>>, vector<64x256xf32>
    %cst_9 = arith.constant dense<0.000000e+00> : vector<8x256xf32>
    %10 = tpu.matmul %6, %9, %cst_9 {dimension_numbers = #tpu.dot_dimension_numbers<[1], [0], [0], [1], [0, 0, 1, 1], [], []>} : vector<8x64xf32>, vector<64x256xf32>, vector<8x256xf32> -> vector<8x256xf32>
    %11 = arith.addf %8, %10 : vector<8x256xf32>
    %12 = arith.negf %11 : vector<8x256xf32>
    %13 = math.exp %12 : vector<8x256xf32>
    %cst_10 = arith.constant 1.000000e+00 : f32
    %14 = vector.broadcast %cst_10 : f32 to vector<8x256xf32>
    %15 = arith.addf %14, %13 : vector<8x256xf32>
    %16 = arith.divf %14, %15 : vector<8x256xf32>
    %17 = vector.extract_strided_slice %16 {offsets = [0, 0], sizes = [8, 64], strides = [1, 1]} : vector<8x256xf32> to vector<8x64xf32>
    %18 = vector.extract_strided_slice %16 {offsets = [0, 64], sizes = [8, 64], strides = [1, 1]} : vector<8x256xf32> to vector<8x64xf32>
    %19 = vector.extract_strided_slice %16 {offsets = [0, 128], sizes = [8, 64], strides = [1, 1]} : vector<8x256xf32> to vector<8x64xf32>
    %cst_11 = arith.constant 2.000000e+00 : f32
    %20 = vector.broadcast %cst_11 : f32 to vector<8x64xf32>
    %21 = arith.mulf %20, %19 : vector<8x64xf32>
    %cst_12 = arith.constant 1.000000e+00 : f32
    %22 = vector.broadcast %cst_12 : f32 to vector<8x64xf32>
    %23 = arith.subf %21, %22 : vector<8x64xf32>
    %24 = vector.extract_strided_slice %16 {offsets = [0, 192], sizes = [8, 64], strides = [1, 1]} : vector<8x256xf32> to vector<8x64xf32>
    %25 = arith.mulf %18, %7 : vector<8x64xf32>
    %26 = arith.mulf %17, %23 : vector<8x64xf32>
    %27 = arith.addf %25, %26 : vector<8x64xf32>
    %28 = math.tanh %27 : vector<8x64xf32>
    %29 = arith.mulf %24, %28 : vector<8x64xf32>
    %30 = arith.negf %29 : vector<8x64xf32>
    %31 = math.exp %30 : vector<8x64xf32>
    %cst_13 = arith.constant 1.000000e+00 : f32
    %32 = vector.broadcast %cst_13 : f32 to vector<8x64xf32>
    %33 = arith.addf %32, %31 : vector<8x64xf32>
    %34 = arith.divf %32, %33 : vector<8x64xf32>
    %c0_14 = arith.constant 0 : index
    %c0_15 = arith.constant 0 : index
    %35 = vector.load %arg7[%c0_14, %c0_15] : memref<8x320xf32, #tpu.memory_space<vmem>>, vector<8x64xf32>
    tpu.vector_store %arg7[%c0_14, %c0_15], %34 {strides = array<i32>} : memref<8x320xf32, #tpu.memory_space<vmem>>, vector<8x64xf32>,
    %36 = vector.extract_strided_slice %5 {offsets = [8, 0], sizes = [8, 256], strides = [1, 1]} : vector<40x256xf32> to vector<8x256xf32>
    %c0_16 = arith.constant 0 : index
    %c0_17 = arith.constant 0 : index
    %37 = vector.load %arg2[%c0_16, %c0_17] : memref<64x256xf32, #tpu.memory_space<vmem>>, vector<64x256xf32>
    %cst_18 = arith.constant dense<0.000000e+00> : vector<8x256xf32>
    %38 = tpu.matmul %29, %37, %cst_18 {dimension_numbers = #tpu.dot_dimension_numbers<[1], [0], [0], [1], [0, 0, 1, 1], [], []>} : vector<8x64xf32>, vector<64x256xf32>, vector<8x256xf32> -> vector<8x256xf32>
    %39 = arith.addf %36, %38 : vector<8x256xf32>
    %40 = arith.negf %39 : vector<8x256xf32>
    %41 = math.exp %40 : vector<8x256xf32>
    %cst_19 = arith.constant 1.000000e+00 : f32
    %42 = vector.broadcast %cst_19 : f32 to vector<8x256xf32>
    %43 = arith.addf %42, %41 : vector<8x256xf32>
    %44 = arith.divf %42, %43 : vector<8x256xf32>
    %45 = vector.extract_strided_slice %44 {offsets = [0, 0], sizes = [8, 64], strides = [1, 1]} : vector<8x256xf32> to vector<8x64xf32>
    %46 = vector.extract_strided_slice %44 {offsets = [0, 64], sizes = [8, 64], strides = [1, 1]} : vector<8x256xf32> to vector<8x64xf32>
    %47 = vector.extract_strided_slice %44 {offsets = [0, 128], sizes = [8, 64], strides = [1, 1]} : vector<8x256xf32> to vector<8x64xf32>
    %cst_20 = arith.constant 2.000000e+00 : f32
    %48 = vector.broadcast %cst_20 : f32 to vector<8x64xf32>
    %49 = arith.mulf %48, %47 : vector<8x64xf32>
    %cst_21 = arith.constant 1.000000e+00 : f32
    %50 = vector.broadcast %cst_21 : f32 to vector<8x64xf32>
    %51 = arith.subf %49, %50 : vector<8x64xf32>
    %52 = vector.extract_strided_slice %44 {offsets = [0, 192], sizes = [8, 64], strides = [1, 1]} : vector<8x256xf32> to vector<8x64xf32>
    %53 = arith.mulf %46, %27 : vector<8x64xf32>
    %54 = arith.mulf %45, %51 : vector<8x64xf32>
    %55 = arith.addf %53, %54 : vector<8x64xf32>
    %56 = math.tanh %55 : vector<8x64xf32>
    %57 = arith.mulf %52, %56 : vector<8x64xf32>
    %58 = arith.negf %57 : vector<8x64xf32>
    %59 = math.exp %58 : vector<8x64xf32>
    %cst_22 = arith.constant 1.000000e+00 : f32
    %60 = vector.broadcast %cst_22 : f32 to vector<8x64xf32>
    %61 = arith.addf %60, %59 : vector<8x64xf32>
    %62 = arith.divf %60, %61 : vector<8x64xf32>
    %c0_23 = arith.constant 0 : index
    %c64 = arith.constant 64 : index
    %63 = vector.load %arg7[%c0_23, %c64] : memref<8x320xf32, #tpu.memory_space<vmem>>, vector<8x64xf32>
    tpu.vector_store %arg7[%c0_23, %c64], %62 {strides = array<i32>} : memref<8x320xf32, #tpu.memory_space<vmem>>, vector<8x64xf32>,
    %64 = vector.extract_strided_slice %5 {offsets = [16, 0], sizes = [8, 256], strides = [1, 1]} : vector<40x256xf32> to vector<8x256xf32>
    %c0_24 = arith.constant 0 : index
    %c0_25 = arith.constant 0 : index
    %65 = vector.load %arg2[%c0_24, %c0_25] : memref<64x256xf32, #tpu.memory_space<vmem>>, vector<64x256xf32>
    %cst_26 = arith.constant dense<0.000000e+00> : vector<8x256xf32>
    %66 = tpu.matmul %57, %65, %cst_26 {dimension_numbers = #tpu.dot_dimension_numbers<[1], [0], [0], [1], [0, 0, 1, 1], [], []>} : vector<8x64xf32>, vector<64x256xf32>, vector<8x256xf32> -> vector<8x256xf32>
    %67 = arith.addf %64, %66 : vector<8x256xf32>
    %68 = arith.negf %67 : vector<8x256xf32>
    %69 = math.exp %68 : vector<8x256xf32>
    %cst_27 = arith.constant 1.000000e+00 : f32
    %70 = vector.broadcast %cst_27 : f32 to vector<8x256xf32>
    %71 = arith.addf %70, %69 : vector<8x256xf32>
    %72 = arith.divf %70, %71 : vector<8x256xf32>
    %73 = vector.extract_strided_slice %72 {offsets = [0, 0], sizes = [8, 64], strides = [1, 1]} : vector<8x256xf32> to vector<8x64xf32>
    %74 = vector.extract_strided_slice %72 {offsets = [0, 64], sizes = [8, 64], strides = [1, 1]} : vector<8x256xf32> to vector<8x64xf32>
    %75 = vector.extract_strided_slice %72 {offsets = [0, 128], sizes = [8, 64], strides = [1, 1]} : vector<8x256xf32> to vector<8x64xf32>
    %cst_28 = arith.constant 2.000000e+00 : f32
    %76 = vector.broadcast %cst_28 : f32 to vector<8x64xf32>
    %77 = arith.mulf %76, %75 : vector<8x64xf32>
    %cst_29 = arith.constant 1.000000e+00 : f32
    %78 = vector.broadcast %cst_29 : f32 to vector<8x64xf32>
    %79 = arith.subf %77, %78 : vector<8x64xf32>
    %80 = vector.extract_strided_slice %72 {offsets = [0, 192], sizes = [8, 64], strides = [1, 1]} : vector<8x256xf32> to vector<8x64xf32>
    %81 = arith.mulf %74, %55 : vector<8x64xf32>
    %82 = arith.mulf %73, %79 : vector<8x64xf32>
    %83 = arith.addf %81, %82 : vector<8x64xf32>
    %84 = math.tanh %83 : vector<8x64xf32>
    %85 = arith.mulf %80, %84 : vector<8x64xf32>
    %86 = arith.negf %85 : vector<8x64xf32>
    %87 = math.exp %86 : vector<8x64xf32>
    %cst_30 = arith.constant 1.000000e+00 : f32
    %88 = vector.broadcast %cst_30 : f32 to vector<8x64xf32>
    %89 = arith.addf %88, %87 : vector<8x64xf32>
    %90 = arith.divf %88, %89 : vector<8x64xf32>
    %c0_31 = arith.constant 0 : index
    %c128 = arith.constant 128 : index
    %91 = vector.load %arg7[%c0_31, %c128] : memref<8x320xf32, #tpu.memory_space<vmem>>, vector<8x64xf32>
    tpu.vector_store %arg7[%c0_31, %c128], %90 {strides = array<i32>} : memref<8x320xf32, #tpu.memory_space<vmem>>, vector<8x64xf32>,
    %92 = vector.extract_strided_slice %5 {offsets = [24, 0], sizes = [8, 256], strides = [1, 1]} : vector<40x256xf32> to vector<8x256xf32>
    %c0_32 = arith.constant 0 : index
    %c0_33 = arith.constant 0 : index
    %93 = vector.load %arg2[%c0_32, %c0_33] : memref<64x256xf32, #tpu.memory_space<vmem>>, vector<64x256xf32>
    %cst_34 = arith.constant dense<0.000000e+00> : vector<8x256xf32>
    %94 = tpu.matmul %85, %93, %cst_34 {dimension_numbers = #tpu.dot_dimension_numbers<[1], [0], [0], [1], [0, 0, 1, 1], [], []>} : vector<8x64xf32>, vector<64x256xf32>, vector<8x256xf32> -> vector<8x256xf32>
    %95 = arith.addf %92, %94 : vector<8x256xf32>
    %96 = arith.negf %95 : vector<8x256xf32>
    %97 = math.exp %96 : vector<8x256xf32>
    %cst_35 = arith.constant 1.000000e+00 : f32
    %98 = vector.broadcast %cst_35 : f32 to vector<8x256xf32>
    %99 = arith.addf %98, %97 : vector<8x256xf32>
    %100 = arith.divf %98, %99 : vector<8x256xf32>
    %101 = vector.extract_strided_slice %100 {offsets = [0, 0], sizes = [8, 64], strides = [1, 1]} : vector<8x256xf32> to vector<8x64xf32>
    %102 = vector.extract_strided_slice %100 {offsets = [0, 64], sizes = [8, 64], strides = [1, 1]} : vector<8x256xf32> to vector<8x64xf32>
    %103 = vector.extract_strided_slice %100 {offsets = [0, 128], sizes = [8, 64], strides = [1, 1]} : vector<8x256xf32> to vector<8x64xf32>
    %cst_36 = arith.constant 2.000000e+00 : f32
    %104 = vector.broadcast %cst_36 : f32 to vector<8x64xf32>
    %105 = arith.mulf %104, %103 : vector<8x64xf32>
    %cst_37 = arith.constant 1.000000e+00 : f32
    %106 = vector.broadcast %cst_37 : f32 to vector<8x64xf32>
    %107 = arith.subf %105, %106 : vector<8x64xf32>
    %108 = vector.extract_strided_slice %100 {offsets = [0, 192], sizes = [8, 64], strides = [1, 1]} : vector<8x256xf32> to vector<8x64xf32>
    %109 = arith.mulf %102, %83 : vector<8x64xf32>
    %110 = arith.mulf %101, %107 : vector<8x64xf32>
    %111 = arith.addf %109, %110 : vector<8x64xf32>
    %112 = math.tanh %111 : vector<8x64xf32>
    %113 = arith.mulf %108, %112 : vector<8x64xf32>
    %114 = arith.negf %113 : vector<8x64xf32>
    %115 = math.exp %114 : vector<8x64xf32>
    %cst_38 = arith.constant 1.000000e+00 : f32
    %116 = vector.broadcast %cst_38 : f32 to vector<8x64xf32>
    %117 = arith.addf %116, %115 : vector<8x64xf32>
    %118 = arith.divf %116, %117 : vector<8x64xf32>
    %c0_39 = arith.constant 0 : index
    %c192 = arith.constant 192 : index
    %119 = vector.load %arg7[%c0_39, %c192] : memref<8x320xf32, #tpu.memory_space<vmem>>, vector<8x64xf32>
    tpu.vector_store %arg7[%c0_39, %c192], %118 {strides = array<i32>} : memref<8x320xf32, #tpu.memory_space<vmem>>, vector<8x64xf32>,
    %120 = vector.extract_strided_slice %5 {offsets = [32, 0], sizes = [8, 256], strides = [1, 1]} : vector<40x256xf32> to vector<8x256xf32>
    %c0_40 = arith.constant 0 : index
    %c0_41 = arith.constant 0 : index
    %121 = vector.load %arg2[%c0_40, %c0_41] : memref<64x256xf32, #tpu.memory_space<vmem>>, vector<64x256xf32>
    %cst_42 = arith.constant dense<0.000000e+00> : vector<8x256xf32>
    %122 = tpu.matmul %113, %121, %cst_42 {dimension_numbers = #tpu.dot_dimension_numbers<[1], [0], [0], [1], [0, 0, 1, 1], [], []>} : vector<8x64xf32>, vector<64x256xf32>, vector<8x256xf32> -> vector<8x256xf32>
    %123 = arith.addf %120, %122 : vector<8x256xf32>
    %124 = arith.negf %123 : vector<8x256xf32>
    %125 = math.exp %124 : vector<8x256xf32>
    %cst_43 = arith.constant 1.000000e+00 : f32
    %126 = vector.broadcast %cst_43 : f32 to vector<8x256xf32>
    %127 = arith.addf %126, %125 : vector<8x256xf32>
    %128 = arith.divf %126, %127 : vector<8x256xf32>
    %129 = vector.extract_strided_slice %128 {offsets = [0, 0], sizes = [8, 64], strides = [1, 1]} : vector<8x256xf32> to vector<8x64xf32>
    %130 = vector.extract_strided_slice %128 {offsets = [0, 64], sizes = [8, 64], strides = [1, 1]} : vector<8x256xf32> to vector<8x64xf32>
    %131 = vector.extract_strided_slice %128 {offsets = [0, 128], sizes = [8, 64], strides = [1, 1]} : vector<8x256xf32> to vector<8x64xf32>
    %cst_44 = arith.constant 2.000000e+00 : f32
    %132 = vector.broadcast %cst_44 : f32 to vector<8x64xf32>
    %133 = arith.mulf %132, %131 : vector<8x64xf32>
    %cst_45 = arith.constant 1.000000e+00 : f32
    %134 = vector.broadcast %cst_45 : f32 to vector<8x64xf32>
    %135 = arith.subf %133, %134 : vector<8x64xf32>
    %136 = vector.extract_strided_slice %128 {offsets = [0, 192], sizes = [8, 64], strides = [1, 1]} : vector<8x256xf32> to vector<8x64xf32>
    %137 = arith.mulf %130, %111 : vector<8x64xf32>
    %138 = arith.mulf %129, %135 : vector<8x64xf32>
    %139 = arith.addf %137, %138 : vector<8x64xf32>
    %140 = math.tanh %139 : vector<8x64xf32>
    %141 = arith.mulf %136, %140 : vector<8x64xf32>
    %142 = arith.negf %141 : vector<8x64xf32>
    %143 = math.exp %142 : vector<8x64xf32>
    %cst_46 = arith.constant 1.000000e+00 : f32
    %144 = vector.broadcast %cst_46 : f32 to vector<8x64xf32>
    %145 = arith.addf %144, %143 : vector<8x64xf32>
    %146 = arith.divf %144, %145 : vector<8x64xf32>
    %c0_47 = arith.constant 0 : index
    %c256 = arith.constant 256 : index
    %147 = vector.load %arg7[%c0_47, %c256] : memref<8x320xf32, #tpu.memory_space<vmem>>, vector<8x64xf32>
    tpu.vector_store %arg7[%c0_47, %c256], %146 {strides = array<i32>} : memref<8x320xf32, #tpu.memory_space<vmem>>, vector<8x64xf32>,
    %c0_48 = arith.constant 0 : index
    %c0_49 = arith.constant 0 : index
    %148 = vector.load %arg7[%c0_48, %c0_49] : memref<8x320xf32, #tpu.memory_space<vmem>>, vector<8x320xf32>
    %c0_50 = arith.constant 0 : index
    %c0_51 = arith.constant 0 : index
    %149 = vector.load %arg4[%c0_50, %c0_51] : memref<320x128xf32, #tpu.memory_space<vmem>>, vector<320x128xf32>
    %cst_52 = arith.constant dense<0.000000e+00> : vector<8x128xf32>
    %150 = tpu.matmul %148, %149, %cst_52 {dimension_numbers = #tpu.dot_dimension_numbers<[1], [0], [0], [1], [0, 0, 1, 1], [], []>} : vector<8x320xf32>, vector<320x128xf32>, vector<8x128xf32> -> vector<8x128xf32>
    %c0_53 = arith.constant 0 : index
    %c0_54 = arith.constant 0 : index
    %151 = vector.load %arg5[%c0_53, %c0_54] : memref<1x128xf32, #tpu.memory_space<vmem>>, vector<1x128xf32>
    %152 = vector.broadcast %151 : vector<1x128xf32> to vector<8x128xf32>
    %153 = arith.addf %150, %152 : vector<8x128xf32>
    %c0_55 = arith.constant 0 : index
    %c0_56 = arith.constant 0 : index
    %154 = vector.load %arg6[%c0_55, %c0_56] : memref<8x128xf32, #tpu.memory_space<vmem>>, vector<8x128xf32>
    tpu.vector_store %arg6[%c0_55, %c0_56], %153 {strides = array<i32>} : memref<8x128xf32, #tpu.memory_space<vmem>>, vector<8x128xf32>,
    return
  }
}

</mosaic_0001>

<bundles_post_ra>
// kernel: tpu_custom_call.1
= control target key start
LH: loop header
LB: loop body
LE: loop exit
PB: predicated region body
PF: predicated region fallthrough
CT: control target
= control target key end

     0   :  { %11 = vsyncpa [#allocation4], 0  ;;  %s1436_s0 = inlined_call_operand.vmem [shape: f32[40,16], index: 0, kind: input, shape index: {}]   ;;  %s1437_s1 = inlined_call_operand.vmem [shape: f32[16,256], index: 1, kind: input, shape index: {}]   ;;  %s1438_s2 = inlined_call_operand.hbm [shape: f32[64,256], index: 2, kind: input, shape index: {}]   ;;  %s1439_s3 = inlined_call_operand.vmem [shape: f32[1,256], index: 3, kind: input, shape index: {}]   ;;  %s1440_s4 = inlined_call_operand.hbm [shape: f32[320,128], index: 4, kind: input, shape index: {}]   ;;  %s1441_s5 = inlined_call_operand.vmem [shape: f32[1,128], index: 5, kind: input, shape index: {}]   ;;  %s1442_s6 = inlined_call_operand.hbm [shape: f32[8,128], index: 6, kind: output, shape index: {}]  }
   0x1   :  { %12 = vsyncpa [#allocation7], 0 }
   0x2   :  { %13 = vsyncpa [#allocation5], 0  ;;  %s22_s23 = sshll.u32 %s1438_s2, 4  ;;  %s1149_s24 = smov [#allocation3]   ;;  %s23_s23 = int_to_ptr.hbm [resolvable:$true] %s22_s23 }
   0x3   :  { %s24_s25 = sshll.u32 %s1149_s24, 4  ;;  %s37_s28 = sshll.u32 %s1440_s4, 4  ;;  %s25_s25 = int_to_ptr.vmem [resolvable:$true] %s24_s25  ;;  %s38_s28 = int_to_ptr.hbm [resolvable:$true] %s37_s28 }
   0x4   :  { %s1150_s29 = smov 256   ;;  %s1151_s30 = smov 16  }
   0x5   :  { %30 = dma.hbm_to_vmem [thread:$0]  %s23_s23, 2048, %s25_s25, [#allocation4], %s1150_s29, %s1150_s29, %s1151_s30  }
   0x6   :  { %s1152_s7 = smov [#allocation6]   ;;  %s1153_s9 = smov 128  }
   0x7   :  { %s39_s8 = sshll.u32 %s1152_s7, 4  ;;  %s1154_s10 = smov 8   ;;  %s40_s8 = int_to_ptr.vmem [resolvable:$true] %s39_s8 }
   0x8   :  { %45 = dma.hbm_to_vmem [thread:$0]  %s38_s28, 5120, %s40_s8, [#allocation7], %s1153_s9, %s1153_s9, %s1154_s10  }
   0x9   :  { %1143 = dma.done.wait [#allocation4], 2048  }
   0xa   :  { %1144 = vsyncadd [#allocation4], 4294965248 }
   0xb   :  { %1145 = dma.done.wait [#allocation7], 5120  }
   0xc   :  { %1146 = vsyncadd [#allocation7], 4294962176  ;;  %v64_v0 = vld [vmem:[%s1437_s1 + $0x18] sm:$0xff]  ;;  %v1202_v1 = vld [vmem:[#allocation3 + $0x78] sm:$0xff]  ;;  %vm71_vm0 = vcmask 130048   ;;  %v1155_v21 = vmov 0.0  }
   0xd   :  { %v62_v2 = vld [vmem:[%s1437_s1 + $0x8] sm:$0xff]  ;;  %133 = vmatpush.msra.mxu1 %v64_v0  ;;  %199 = vmatpush.msra.mxu3 %v1202_v1  ;;  %v1208_v3 = vld [vmem:[#allocation3 + $0x68] sm:$0xff]  ;;  %v1215_v6 = vld [vmem:[#allocation3 + $0x58] sm:$0xff]  ;;  %vm167_vm9 = vcmask 523264   ;;  %s1157_s29 = smov [#allocation8]   ;;  %s941_s9 = sshll.u32 %s1442_s6, 4  ;;  %s942_s9 = int_to_ptr.hbm [resolvable:$true] %s941_s9 }
   0xe   :  { %v56_v4 = vld [vmem:[%s1436_s0] sm:$0xff]  ;;  %v1213_v5 = vld [vmem:[#allocation3 + $0x70] sm:$0xff]  ;;  %v1219_v7 = vld [vmem:[#allocation3 + $0x60] sm:$0xff]  ;;  %s939_s30 = sshll.u32 %s1157_s29, 4  ;;  %s940_s30 = int_to_ptr.vmem [resolvable:$true] %s939_s30 }
   0xf   :  { %315 = vmatpush.msra.mxu2 %v1213_v5  ;;  %134 = vmatpush.msra.mxu1 %v62_v2  ;;  %v1222_v8 = vld [vmem:[#allocation3 + $0x48] sm:$0xff]  ;;  %v1227_v9 = vld [vmem:[#allocation3 + $0x50] sm:$0xff]  ;;  %v1229_v10 = vld [vmem:[#allocation3 + $0x38] sm:$0xff] }
  0x10   :  { %200 = vmatpush.msra.mxu3 %v1208_v3  ;;  %957 = vmatmul.msk.f32.vlgmr.msra.gmra.mxu1 %vm71_vm0, %v56_v4  ;;  %v1234_v11 = vld [vmem:[#allocation3 + $0x40] sm:$0xff]  ;;  %v63_v12 = vld [vmem:[%s1437_s1 + $0x10] sm:$0xff]  ;;  %v1239_v13 = vld [vmem:[#allocation3 + $0x28] sm:$0xff] }
  0x11   :  { %316 = vmatpush.msra.mxu2 %v1219_v7  ;;  %179 = vmatpush.msrb.mxu1 %v1213_v5  ;;  %v61_v14 = vld [vmem:[%s1437_s1] sm:$0xff]  ;;  %v57_v15 = vld [vmem:[%s1436_s0 + $0x8] sm:$0xff]  ;;  %v1252_v17 = vld [vmem:[#allocation3 + $0x18] sm:$0xff] }
  0x12   :  { %201 = vmatpush.msra.mxu3 %v1215_v6  ;;  %101 = vmatpush.msra.mxu0 %v63_v12  ;;  %v1250_v16 = vld [vmem:[#allocation3 + $0x30] sm:$0xff]  ;;  %v1258_v18 = vld [vmem:[#allocation3 + $0x8] sm:$0xff]  ;;  %v1260_v19 = vld [vmem:[#allocation3 + $0x20] sm:$0xff] }
  0x13   :  { %317 = vmatpush.msra.mxu2 %v1227_v9  ;;  %180 = vmatpush.msrb.mxu1 %v1219_v7  ;;  %v1265_v20 = vld [vmem:[#allocation3 + $0x10] sm:$0xff]  ;;  %v1271_v22 = vld [vmem:[#allocation3] sm:$0xff]  ;;  %v58_v23 = vld [vmem:[%s1436_s0 + $0x10] sm:$0xff] }
  0x14   :  { %202 = vmatpush.msra.mxu3 %v1222_v8  ;;  %102 = vmatpush.msra.mxu0 %v61_v14  ;;  %v59_v24 = vld [vmem:[%s1436_s0 + $0x18] sm:$0xff]  ;;  %v60_v25 = vld [vmem:[%s1436_s0 + $0x20] sm:$0xff] }
  0x15   :  { %318 = vmatpush.msra.mxu2 %v1234_v11  ;;  %181 = vmatpush.msrb.mxu1 %v1227_v9  ;;  %v65_v27 = vld [vmem:[%s1439_s3] sm:$0x3]  ;;  %s1156_s3 = smov 64  }
  0x16   :  { %203 = vmatpush.msra.mxu3 %v1229_v10  ;;  %952 = vmatmul.msk.f32.vlgmr.msra.gmra.mxu0 %vm71_vm0, %v56_v4  ;;  %v68_v28 = vperm.slane %v65_v27, 1  ;;  %v1359_v43 = vperm.slane %v65_v27, 0 }
  0x17   :  { %319 = vmatpush.msra.mxu2 %v1250_v16  ;;  %182 = vmatpush.msrb.mxu1 %v1234_v11 }
  0x18   :  { %204 = vmatpush.msra.mxu3 %v1239_v13  ;;  %958 = vmatmul.msk.f32.gmra.mxu1 %vm71_vm0, %v57_v15 }
  0x19   :  { %183 = vmatpush.msrb.mxu1 %v1250_v16  ;;  %320 = vmatpush.msra.mxu2 %v1260_v19 }
  0x1a   :  { %205 = vmatpush.msra.mxu3 %v1252_v17  ;;  %448 = vmatpush.msrb.mxu0 %v1213_v5 }
  0x1b   :  { %184 = vmatpush.msrb.mxu1 %v1260_v19  ;;  %321 = vmatpush.msra.mxu2 %v1265_v20 }
  0x1c   :  { %206 = vmatpush.msra.mxu3 %v1258_v18  ;;  %449 = vmatpush.msrb.mxu0 %v1219_v7 }
  0x1d   :  { %207 = vmatmul.f32.vlgmr.msra.gmra.mxu3 %v1155_v21  ;;  %185 = vmatpush.msrb.mxu1 %v1265_v20 }
  0x1e   :  { %335 = vmatpush.msrb.mxu3 %v1202_v1  ;;  %322 = vmatpush.msra.mxu2 %v1271_v22 }
  0x1f   :  { %186 = vmatpush.msrb.mxu1 %v1271_v22  ;;  %953 = vmatmul.msk.f32.gmra.mxu0 %vm71_vm0, %v57_v15 }
  0x20   :  { %336 = vmatpush.msrb.mxu3 %v1208_v3  ;;  %959 = vmatmul.msk.f32.gmra.mxu1 %vm71_vm0, %v58_v23 }
  0x21   :  { %450 = vmatpush.msrb.mxu0 %v1227_v9  ;;  %468 = vmatpush.msra.mxu1 %v1202_v1 }
  0x22   :  { %337 = vmatpush.msrb.mxu3 %v1215_v6  ;;  %584 = vmatpush.msrb.mxu2 %v1213_v5 }
  0x23   :  { %451 = vmatpush.msrb.mxu0 %v1234_v11  ;;  %469 = vmatpush.msra.mxu1 %v1208_v3 }
  0x24   :  { %338 = vmatpush.msrb.mxu3 %v1222_v8  ;;  %585 = vmatpush.msrb.mxu2 %v1219_v7 }
  0x25   :  { %452 = vmatpush.msrb.mxu0 %v1250_v16  ;;  %470 = vmatpush.msra.mxu1 %v1215_v6 }
  0x26   :  { %339 = vmatpush.msrb.mxu3 %v1229_v10  ;;  %586 = vmatpush.msrb.mxu2 %v1227_v9 }
  0x27   :  { %453 = vmatpush.msrb.mxu0 %v1260_v19  ;;  %471 = vmatpush.msra.mxu1 %v1222_v8 }
  0x28   :  { %340 = vmatpush.msrb.mxu3 %v1239_v13  ;;  %960 = vmatmul.msk.f32.gmra.mxu1 %vm71_vm0, %v59_v24 }
  0x29   :  { %954 = vmatmul.msk.f32.gmra.mxu0 %vm71_vm0, %v58_v23  ;;  %587 = vmatpush.msrb.mxu2 %v1234_v11 }
  0x2a   :  { %341 = vmatpush.msrb.mxu3 %v1252_v17  ;;  %454 = vmatpush.msrb.mxu0 %v1265_v20 }
  0x2b   :  { %472 = vmatpush.msra.mxu1 %v1229_v10  ;;  %588 = vmatpush.msrb.mxu2 %v1250_v16 }
  0x2c   :  { %342 = vmatpush.msrb.mxu3 %v1258_v18  ;;  %455 = vmatpush.msrb.mxu0 %v1271_v22 }
  0x2d   :  { %473 = vmatpush.msra.mxu1 %v1239_v13  ;;  %589 = vmatpush.msrb.mxu2 %v1260_v19 }
  0x2e   :  { %604 = vmatpush.msra.mxu3 %v1202_v1  ;;  %716 = vmatpush.msra.mxu0 %v1213_v5 }
  0x2f   :  { %474 = vmatpush.msra.mxu1 %v1252_v17  ;;  %590 = vmatpush.msrb.mxu2 %v1265_v20 }
  0x30   :  { %605 = vmatpush.msra.mxu3 %v1208_v3  ;;  %961 = vmatmul.msk.f32.gmra.mxu1 %vm71_vm0, %v60_v25 }
  0x31   :  { %955 = vmatmul.msk.f32.gmra.mxu0 %vm71_vm0, %v59_v24  ;;  %475 = vmatpush.msra.mxu1 %v1258_v18 }
  0x32   :  { %606 = vmatpush.msra.mxu3 %v1215_v6  ;;  %717 = vmatpush.msra.mxu0 %v1219_v7 }
  0x33   :  { %591 = vmatpush.msrb.mxu2 %v1271_v22 }
  0x34   :  { %607 = vmatpush.msra.mxu3 %v1222_v8  ;;  %718 = vmatpush.msra.mxu0 %v1227_v9 }
  0x36   :  { %608 = vmatpush.msra.mxu3 %v1229_v10  ;;  %719 = vmatpush.msra.mxu0 %v1234_v11 }
  0x38   :  { %609 = vmatpush.msra.mxu3 %v1239_v13  ;;  %187 = vmatmul.f32.vlgmr.msrb.gmra.mxu1 %v1155_v21 }
  0x39   :  { %956 = vmatmul.msk.f32.gmra.mxu0 %vm71_vm0, %v60_v25  ;;  %736 = vmatpush.msrb.mxu1 %v1202_v1 }
  0x3a   :  { %610 = vmatpush.msra.mxu3 %v1252_v17  ;;  %720 = vmatpush.msra.mxu0 %v1250_v16 }
  0x3b   :  { %737 = vmatpush.msrb.mxu1 %v1208_v3 }
  0x3c   :  { %611 = vmatpush.msra.mxu3 %v1258_v18  ;;  %721 = vmatpush.msra.mxu0 %v1260_v19 }
  0x3d   :  { %738 = vmatpush.msrb.mxu1 %v1215_v6 }
  0x3e   :  { %722 = vmatpush.msra.mxu0 %v1265_v20 }
  0x3f   :  { %739 = vmatpush.msrb.mxu1 %v1222_v8 }
  0x40   :  { %723 = vmatpush.msra.mxu0 %v1271_v22 }
  0x41   :  { %740 = vmatpush.msrb.mxu1 %v1229_v10 }
  0x43   :  { %741 = vmatpush.msrb.mxu1 %v1239_v13 }
  0x45   :  { %742 = vmatpush.msrb.mxu1 %v1252_v17 }
  0x47   :  { %743 = vmatpush.msrb.mxu1 %v1258_v18 }
  0x8d   :  { %v136_v26 = vpop.f32.mrf.mxu1 }
  0x8e   :  { %v137_v32 = vadd.f32 %v136_v26, %v68_v28 }
  0x93   :  { %v104_v44 = vpop.f32.mrf.mxu0 }
  0x94   :  { %v105_v45 = vadd.f32 %v104_v44, %v1359_v43 }
  0x95   :  { %v139_v29 = vpop.f32.mrf.mxu1 }
  0x96   :  { %v1351_v30 = vadd.f32 %v139_v29, %v68_v28 }
  0x9c   :  { %v107_v16 = vpop.f32.mrf.mxu0 }
  0x9d   :  { %v142_v31 = vpop.f32.mrf.mxu1  ;;  %v108_v17 = vadd.f32 %v107_v16, %v1359_v43 }
  0x9e   :  { %v1353_v33 = vadd.f32 %v142_v31, %v68_v28 }
  0xa0   :  { %v208_v34 = vpop.f32.mrf.mxu3 }
  0xa1   :  { %v212_v35 = vadd.f32 %v208_v34, %v137_v32 }
  0xa3   :  { %v963_v36 = vmul.f32 -1.442695, %v212_v35 }
  0xa5   :  { %1001 = vpow2.f32 %v963_v36  ;;  %v145_v37 = vpop.f32.mrf.mxu1 }
  0xa6   :  { %v1355_v38 = vadd.f32 %v145_v37, %v68_v28 }
  0xab   :  { %v1002_v39 = vpop.eup %1001 }
  0xac   :  { %v220_v40 = vadd.f32 1.0, %v1002_v39 }
  0xad   :  { %v148_v41 = vpop.f32.mrf.mxu1 }
  0xae   :  { %v1357_v42 = vadd.f32 %v148_v41, %v68_v28  ;;  %1003 = vrcp.f32 %v220_v40  ;;  %v247_v56 = vand.u32 2147483648, %v220_v40  ;;  %vm241_vm2 = vweird.f32 %v220_v40 }
  0xaf   :  { %v245_v57 = vand.u32 2147483647, %v220_v40 }
  0xb0   :  { %v248_v60 = vor.u32 1.1754944e-38, %v247_v56 }
  0xb1   :  { %vm246_vm4 = vcmp.eq.f32.partialorder %v245_v57, 8.507059e+37 }
  0xb4   :  { %v1004_v46 = vpop.eup %1003 }
  0xb5   :  { %v188_v47 = vpop.f32.mrf.mxu1  ;;  %v237_v49 = vmul.f32 %v1004_v46, %v220_v40  ;;  %vm242_vm1 = vweird.f32 %v1004_v46 }
  0xb6   :  { %v211_v48 = vadd.f32 %v188_v47, %v105_v45  ;;  %vm243_vm3 = vmor %vm241_vm2, %vm242_vm1 }
  0xb7   :  { %v238_v51 = vsub.f32 1.0, %v237_v49 }
  0xb8   :  { %v962_v50 = vmul.f32 -1.442695, %v211_v48 }
  0xb9   :  { %v239_v53 = vmul.f32 %v1004_v46, %v238_v51 }
  0xba   :  { %1005 = vpow2.f32 %v962_v50 }
  0xbb   :  { %v240_v55 = vadd.f32 %v1004_v46, %v239_v53 }
  0xbd   :  { %v244_v58 = vsel %vm243_vm3, %v1004_v46, %v240_v55 }
  0xbe   :  { %v249_v62 = vsel %vm246_vm4, %v248_v60, %v244_v58 }
  0xbf   :  { %v251_v3 = vmul.f32 2.0, %v249_v62 }
  0xc0   :  { %v1006_v52 = vpop.eup %1005 }
  0xc1   :  { %v219_v54 = vadd.f32 1.0, %v1006_v52  ;;  %v964_v7 = vadd.f32 -1.0, %v251_v3 }
  0xc3   :  { %1007 = vrcp.f32 %v219_v54  ;;  %v232_v0 = vand.u32 2147483648, %v219_v54  ;;  %v230_v2 = vand.u32 2147483647, %v219_v54  ;;  %vm226_vm6 = vweird.f32 %v219_v54 }
  0xc5   :  { %v233_v5 = vor.u32 1.1754944e-38, %v232_v0  ;;  %vm231_vm8 = vcmp.eq.f32.partialorder %v230_v2, 8.507059e+37 }
  0xc9   :  { %v1008_v59 = vpop.eup %1007 }
  0xca   :  { %v222_v61 = vmul.f32 %v1008_v59, %v219_v54  ;;  %vm227_vm5 = vweird.f32 %v1008_v59 }
  0xcb   :  { %vm228_vm7 = vmor %vm226_vm6, %vm227_vm5 }
  0xcc   :  { %v223_v63 = vsub.f32 1.0, %v222_v61  ;;  %v110_v61 = vpop.f32.mrf.mxu0 }
  0xcd   :  { %v111_v0 = vadd.f32 %v110_v61, %v1359_v43 }
  0xce   :  { %v224_v1 = vmul.f32 %v1008_v59, %v223_v63 }
  0xd0   :  { %v225_v4 = vadd.f32 %v1008_v59, %v224_v1 }
  0xd2   :  { %v229_v6 = vsel %vm228_vm7, %v1008_v59, %v225_v4 }
  0xd3   :  { %v234_v8 = vsel %vm231_vm8, %v233_v5, %v229_v6 }
  0xd4   :  { %v254_v9 = vmul.f32 %v964_v7, %v234_v8  ;;  %v253_v10 = vmul.f32 0.0, %v234_v8 }
  0xd6   :  { %256 = vrot.lane.b32.xlu0 %v254_v9, %s1156_s3 }
 0x148   :  { %v257_v11 = vpop.permute.xlu0 %256 }
 0x149   :  { %v259_v12 = vadd.f32 %v257_v11, %v253_v10 }
 0x14b   :  { %1009 = vtanh.f32 %v259_v12 }
 0x151   :  { %v1010_v13 = vpop.eup %1009 }
 0x152   :  { %v1363_v14 = vmul.f32 %v1010_v13, %v249_v62  ;;  %v113_v62 = vpop.f32.mrf.mxu0 }
 0x154   :  { %303 = vrot.lane.b32.xlu0 %v1363_v14, %s1156_s3 }
 0x15a   :  { %v1378_v63 = vpop.f32.mrf.mxu0 }
 0x1c6   :  { %v304_v15 = vpop.permute.xlu0 %303 }
 0x1c7   :  { %966 = vmatmul.msk.f32.vlgmr.msra.gmra.mxu2 %vm167_vm9, %v304_v15  ;;  %967 = vmatmul.msk.f32.vlgmr.msrb.gmra.mxu3 %vm167_vm9, %v304_v15 }
 0x24a   :  { %v324_v18 = vpop.f32.mrf.mxu2  ;;  %v344_v19 = vpop.f32.mrf.mxu3 }
 0x24b   :  { %v347_v20 = vadd.f32 %v324_v18, %v108_v17  ;;  %v348_v21 = vadd.f32 %v344_v19, %v1351_v30 }
 0x24d   :  { %v968_v22 = vmul.f32 -1.442695, %v347_v20  ;;  %v969_v23 = vmul.f32 -1.442695, %v348_v21 }
 0x24f   :  { %1011 = vpow2.f32 %v968_v22 }
 0x250   :  { %1013 = vpow2.f32 %v969_v23 }
 0x255   :  { %v1012_v24 = vpop.eup %1011 }
 0x256   :  { %v1014_v25 = vpop.eup %1013  ;;  %v355_v26 = vadd.f32 1.0, %v1012_v24 }
 0x257   :  { %v356_v27 = vadd.f32 1.0, %v1014_v25 }
 0x258   :  { %1015 = vrcp.f32 %v355_v26  ;;  %v368_v44 = vand.u32 2147483648, %v355_v26  ;;  %vm362_vm14 = vweird.f32 %v355_v26  ;;  %v366_v46 = vand.u32 2147483647, %v355_v26 }
 0x259   :  { %1017 = vrcp.f32 %v356_v27  ;;  %v383_v37 = vand.u32 2147483648, %v356_v27  ;;  %v381_v30 = vand.u32 2147483647, %v356_v27  ;;  %vm377_vm12 = vweird.f32 %v356_v27 }
 0x25a   :  { %v369_v51 = vor.u32 1.1754944e-38, %v368_v44  ;;  %vm367_vm1 = vcmp.eq.f32.partialorder %v366_v46, 8.507059e+37  ;;  %v965_v44 = vmul.f32 -1.442695, %v1363_v14  ;;  %v841_v14 = vld [vmem:[#allocation6 + $0x78] sm:$0xff] }
 0x25b   :  { %v384_v45 = vor.u32 1.1754944e-38, %v383_v37  ;;  %vm382_vm15 = vcmp.eq.f32.partialorder %v381_v30, 8.507059e+37  ;;  %873 = vmatpush.msra.mxu2 %v841_v14  ;;  %v857_v14 = vld [vmem:[#allocation6 + $0xf8] sm:$0xff] }
 0x25c   :  { %893 = vmatpush.msrb.mxu3 %v857_v14 }
 0x25e   :  { %v1016_v28 = vpop.eup %1015 }
 0x25f   :  { %v1018_v29 = vpop.eup %1017  ;;  %v358_v31 = vmul.f32 %v1016_v28, %v355_v26  ;;  %vm363_vm11 = vweird.f32 %v1016_v28 }
 0x260   :  { %v373_v32 = vmul.f32 %v1018_v29, %v356_v27  ;;  %vm378_vm10 = vweird.f32 %v1018_v29  ;;  %vm364_vm0 = vmor %vm362_vm14, %vm363_vm11 }
 0x261   :  { %v359_v34 = vsub.f32 1.0, %v358_v31  ;;  %vm379_vm13 = vmor %vm377_vm12, %vm378_vm10 }
 0x262   :  { %v374_v35 = vsub.f32 1.0, %v373_v32 }
 0x263   :  { %v360_v36 = vmul.f32 %v1016_v28, %v359_v34 }
 0x264   :  { %v375_v39 = vmul.f32 %v1018_v29, %v374_v35 }
 0x265   :  { %v361_v40 = vadd.f32 %v1016_v28, %v360_v36 }
 0x266   :  { %v376_v41 = vadd.f32 %v1018_v29, %v375_v39 }
 0x267   :  { %v365_v49 = vsel %vm364_vm0, %v1016_v28, %v361_v40 }
 0x268   :  { %v380_v47 = vsel %vm379_vm13, %v1018_v29, %v376_v41  ;;  %v370_v53 = vsel %vm367_vm1, %v369_v51, %v365_v49 }
 0x269   :  { %v385_v48 = vsel %vm382_vm15, %v384_v45, %v380_v47  ;;  %v389_v55 = vmul.f32 %v370_v53, %v259_v12  ;;  %v114_v45 = vadd.f32 %v113_v62, %v1359_v43  ;;  %v837_v62 = vld [vmem:[#allocation6 + $0x58] sm:$0xff] }
 0x26a   :  { %v387_v50 = vmul.f32 2.0, %v385_v48 }
 0x26c   :  { %v970_v52 = vadd.f32 -1.0, %v387_v50 }
 0x26e   :  { %v390_v54 = vmul.f32 %v970_v52, %v370_v53 }
 0x270   :  { %392 = vrot.lane.b32.xlu1 %v390_v54, %s1156_s3 }
 0x2e2   :  { %v393_v56 = vpop.permute.xlu1 %392 }
 0x2e3   :  { %v395_v57 = vadd.f32 %v393_v56, %v389_v55 }
 0x2e5   :  { %1019 = vtanh.f32 %v395_v57 }
 0x2eb   :  { %v1020_v58 = vpop.eup %1019 }
 0x2ec   :  { %v1372_v59 = vmul.f32 %v1020_v58, %v385_v48  ;;  %v840_v58 = vld [vmem:[#allocation6 + $0x70] sm:$0xff] }
 0x2ed   :  { %874 = vmatpush.msra.mxu2 %v840_v58  ;;  %v856_v58 = vld [vmem:[#allocation6 + $0xf0] sm:$0xff] }
 0x2ee   :  { %436 = vrot.lane.b32.xlu1 %v1372_v59, %s1156_s3  ;;  %894 = vmatpush.msrb.mxu3 %v856_v58 }
 0x360   :  { %v437_v60 = vpop.permute.xlu1 %436 }
 0x361   :  { %972 = vmatmul.msk.f32.vlgmr.msrb.gmra.mxu0 %vm167_vm9, %v437_v60  ;;  %973 = vmatmul.msk.f32.vlgmr.msra.gmra.mxu1 %vm167_vm9, %v437_v60  ;;  %v838_v60 = vld [vmem:[#allocation6 + $0x60] sm:$0xff] }
 0x3de   :  { %v457_v1 = vpop.f32.mrf.mxu0  ;;  %v477_v2 = vpop.f32.mrf.mxu1 }
 0x3df   :  { %v480_v3 = vadd.f32 %v457_v1, %v111_v0  ;;  %v481_v4 = vadd.f32 %v477_v2, %v1353_v33 }
 0x3e1   :  { %v974_v5 = vmul.f32 -1.442695, %v480_v3  ;;  %v975_v6 = vmul.f32 -1.442695, %v481_v4  ;;  %v836_v4 = vld [vmem:[#allocation6 + $0x50] sm:$0xff] }
 0x3e3   :  { %1021 = vpow2.f32 %v974_v5 }
 0x3e4   :  { %1023 = vpow2.f32 %v975_v6 }
 0x3e9   :  { %v1022_v7 = vpop.eup %1021 }
 0x3ea   :  { %v1024_v8 = vpop.eup %1023  ;;  %v488_v9 = vadd.f32 1.0, %v1022_v7  ;;  %v835_v7 = vld [vmem:[#allocation6 + $0x48] sm:$0xff] }
 0x3eb   :  { %v489_v10 = vadd.f32 1.0, %v1024_v8 }
 0x3ec   :  { %1025 = vrcp.f32 %v488_v9  ;;  %v501_v23 = vand.u32 2147483648, %v488_v9  ;;  %vm495_vm6 = vweird.f32 %v488_v9  ;;  %v499_v25 = vand.u32 2147483647, %v488_v9 }
 0x3ed   :  { %1027 = vrcp.f32 %v489_v10  ;;  %v516_v19 = vand.u32 2147483648, %v489_v10  ;;  %v514_v33 = vand.u32 2147483647, %v489_v10  ;;  %vm510_vm4 = vweird.f32 %v489_v10 }
 0x3ee   :  { %v502_v31 = vor.u32 1.1754944e-38, %v501_v23  ;;  %vm500_vm10 = vcmp.eq.f32.partialorder %v499_v25, 8.507059e+37 }
 0x3ef   :  { %v517_v24 = vor.u32 1.1754944e-38, %v516_v19  ;;  %vm515_vm7 = vcmp.eq.f32.partialorder %v514_v33, 8.507059e+37 }
 0x3f2   :  { %v1026_v11 = vpop.eup %1025 }
 0x3f3   :  { %v1028_v12 = vpop.eup %1027  ;;  %v491_v13 = vmul.f32 %v1026_v11, %v488_v9  ;;  %vm496_vm3 = vweird.f32 %v1026_v11 }
 0x3f4   :  { %v506_v15 = vmul.f32 %v1028_v12, %v489_v10  ;;  %vm511_vm2 = vweird.f32 %v1028_v12  ;;  %vm497_vm8 = vmor %vm495_vm6, %vm496_vm3 }
 0x3f5   :  { %v492_v16 = vsub.f32 1.0, %v491_v13  ;;  %vm512_vm5 = vmor %vm510_vm4, %vm511_vm2 }
 0x3f6   :  { %v507_v17 = vsub.f32 1.0, %v506_v15 }
 0x3f7   :  { %v493_v18 = vmul.f32 %v1026_v11, %v492_v16 }
 0x3f8   :  { %v508_v20 = vmul.f32 %v1028_v12, %v507_v17 }
 0x3f9   :  { %v494_v21 = vadd.f32 %v1026_v11, %v493_v18 }
 0x3fa   :  { %v509_v22 = vadd.f32 %v1028_v12, %v508_v20 }
 0x3fb   :  { %v498_v28 = vsel %vm497_vm8, %v1026_v11, %v494_v21 }
 0x3fc   :  { %v513_v26 = vsel %vm512_vm5, %v1028_v12, %v509_v22  ;;  %v503_v34 = vsel %vm500_vm10, %v502_v31, %v498_v28 }
 0x3fd   :  { %v518_v27 = vsel %vm515_vm7, %v517_v24, %v513_v26  ;;  %v522_v36 = vmul.f32 %v503_v34, %v395_v57 }
 0x3fe   :  { %v520_v29 = vmul.f32 2.0, %v518_v27 }
 0x400   :  { %v976_v32 = vadd.f32 -1.0, %v520_v29 }
 0x402   :  { %v523_v35 = vmul.f32 %v976_v32, %v503_v34 }
 0x404   :  { %525 = vrot.lane.b32.xlu2 %v523_v35, %s1156_s3 }
 0x45e   :  { %v526_v37 = vpop.permute.xlu2 %525 }
 0x45f   :  { %v1383_v39 = vadd.f32 %v526_v37, %v522_v36  ;;  %v971_v36 = vmul.f32 -1.442695, %v1372_v59  ;;  %v834_v37 = vld [vmem:[#allocation6 + $0x40] sm:$0xff]  ;;  %v827_v59 = vld [vmem:[#allocation6 + $0x8] sm:$0xff] }
 0x461   :  { %1029 = vtanh.f32 %v1383_v39 }
 0x462   :  { %1031 = vpow2.f32 %v965_v44  ;;  %v831_v44 = vld [vmem:[#allocation6 + $0x28] sm:$0xff] }
 0x467   :  { %v1030_v30 = vpop.eup %1029 }
 0x468   :  { %v1386_v40 = vmul.f32 %v1030_v30, %v518_v27  ;;  %v1032_v52 = vpop.eup %1031  ;;  %v833_v30 = vld [vmem:[#allocation6 + $0x38] sm:$0xff] }
 0x469   :  { %v1395_v55 = vadd.f32 1.0, %v1032_v52  ;;  %v826_v52 = vld [vmem:[#allocation6] sm:$0xff] }
 0x46a   :  { %572 = vrot.lane.b32.xlu2 %v1386_v40, %s1156_s3 }
 0x46b   :  { %v277_v29 = vand.u32 2147483648, %v1395_v55  ;;  %vm271_vm4 = vweird.f32 %v1395_v55  ;;  %v275_v31 = vand.u32 2147483647, %v1395_v55 }
 0x46d   :  { %v278_v34 = vor.u32 1.1754944e-38, %v277_v29  ;;  %vm276_vm6 = vcmp.eq.f32.partialorder %v275_v31, 8.507059e+37  ;;  %v845_v31 = vld [vmem:[#allocation6 + $0x98] sm:$0xff] }
 0x4c4   :  { %v573_v41 = vpop.permute.xlu2 %572 }
 0x4c5   :  { %978 = vmatmul.msk.f32.vlgmr.msrb.gmra.mxu2 %vm167_vm9, %v573_v41  ;;  %979 = vmatmul.msk.f32.vlgmr.msra.gmra.mxu3 %vm167_vm9, %v573_v41  ;;  %v832_v41 = vld [vmem:[#allocation6 + $0x30] sm:$0xff] }
 0x548   :  { %v593_v46 = vpop.f32.mrf.mxu2  ;;  %v613_v47 = vpop.f32.mrf.mxu3 }
 0x549   :  { %v616_v48 = vadd.f32 %v593_v46, %v114_v45  ;;  %v617_v49 = vadd.f32 %v613_v47, %v1355_v38  ;;  %v839_v38 = vld [vmem:[#allocation6 + $0x68] sm:$0xff]  ;;  %v977_v46 = vmul.f32 -1.442695, %v1386_v40  ;;  %v830_v47 = vld [vmem:[#allocation6 + $0x20] sm:$0xff] }
 0x54a   :  { %875 = vmatpush.msra.mxu2 %v839_v38 }
 0x54b   :  { %v980_v50 = vmul.f32 -1.442695, %v616_v48  ;;  %v981_v51 = vmul.f32 -1.442695, %v617_v49  ;;  %v829_v49 = vld [vmem:[#allocation6 + $0x18] sm:$0xff] }
 0x54c   :  { %876 = vmatpush.msra.mxu2 %v838_v60 }
 0x54d   :  { %1033 = vpow2.f32 %v980_v50  ;;  %v828_v50 = vld [vmem:[#allocation6 + $0x10] sm:$0xff] }
 0x54e   :  { %1035 = vpow2.f32 %v981_v51  ;;  %877 = vmatpush.msra.mxu2 %v837_v62  ;;  %v855_v62 = vld [vmem:[#allocation6 + $0xe8] sm:$0xff] }
 0x54f   :  { %895 = vmatpush.msrb.mxu3 %v855_v62 }
 0x550   :  { %878 = vmatpush.msra.mxu2 %v836_v4 }
 0x552   :  { %879 = vmatpush.msra.mxu2 %v835_v7  ;;  %v852_v7 = vld [vmem:[#allocation6 + $0xd0] sm:$0xff] }
 0x553   :  { %v1034_v53 = vpop.eup %1033 }
 0x554   :  { %v1036_v54 = vpop.eup %1035  ;;  %v624_v56 = vadd.f32 1.0, %v1034_v53  ;;  %880 = vmatpush.msra.mxu2 %v834_v37 }
 0x555   :  { %v625_v57 = vadd.f32 1.0, %v1036_v54 }
 0x556   :  { %1037 = vrcp.f32 %v624_v56  ;;  %v637_v16 = vand.u32 2147483648, %v624_v56  ;;  %vm631_vm15 = vweird.f32 %v624_v56  ;;  %v635_v19 = vand.u32 2147483647, %v624_v56  ;;  %881 = vmatpush.msra.mxu2 %v833_v30 }
 0x557   :  { %1039 = vrcp.f32 %v625_v57  ;;  %v652_v9 = vand.u32 2147483648, %v625_v57  ;;  %v650_v12 = vand.u32 2147483647, %v625_v57  ;;  %vm646_vm13 = vweird.f32 %v625_v57 }
 0x558   :  { %1041 = vrcp.f32 %v1395_v55  ;;  %v638_v23 = vor.u32 1.1754944e-38, %v637_v16  ;;  %vm636_vm2 = vcmp.eq.f32.partialorder %v635_v19, 8.507059e+37  ;;  %882 = vmatpush.msra.mxu2 %v832_v41 }
 0x559   :  { %v653_v17 = vor.u32 1.1754944e-38, %v652_v9  ;;  %vm651_vm0 = vcmp.eq.f32.partialorder %v650_v12, 8.507059e+37  ;;  %1043 = vpow2.f32 %v971_v36 }
 0x55a   :  { %883 = vmatpush.msra.mxu2 %v831_v44  ;;  %1045 = vpow2.f32 %v977_v46 }
 0x55c   :  { %v1038_v61 = vpop.eup %1037  ;;  %884 = vmatpush.msra.mxu2 %v830_v47 }
 0x55d   :  { %v1040_v0 = vpop.eup %1039  ;;  %v627_v1 = vmul.f32 %v1038_v61, %v624_v56  ;;  %vm632_vm12 = vweird.f32 %v1038_v61 }
 0x55e   :  { %v1042_v2 = vpop.eup %1041  ;;  %v642_v3 = vmul.f32 %v1040_v0, %v625_v57  ;;  %vm647_vm11 = vweird.f32 %v1040_v0  ;;  %vm633_vm1 = vmor %vm631_vm15, %vm632_vm12  ;;  %885 = vmatpush.msra.mxu2 %v829_v49 }
 0x55f   :  { %v628_v5 = vsub.f32 1.0, %v627_v1  ;;  %v267_v10 = vmul.f32 %v1042_v2, %v1395_v55  ;;  %vm648_vm14 = vmor %vm646_vm13, %vm647_vm11  ;;  %vm272_vm3 = vweird.f32 %v1042_v2  ;;  %v1044_v45 = vpop.eup %1043  ;;  %vm417_vm11 = vcmask 1048064  }
 0x560   :  { %v643_v6 = vsub.f32 1.0, %v642_v3  ;;  %vm273_vm5 = vmor %vm271_vm4, %vm272_vm3  ;;  %v401_v48 = vadd.f32 1.0, %v1044_v45  ;;  %886 = vmatpush.msra.mxu2 %v828_v50  ;;  %v1046_v51 = vpop.eup %1045 }
 0x561   :  { %v629_v8 = vmul.f32 %v1038_v61, %v628_v5  ;;  %v268_v18 = vsub.f32 1.0, %v267_v10  ;;  %v534_v54 = vadd.f32 1.0, %v1046_v51 }
 0x562   :  { %v644_v11 = vmul.f32 %v1040_v0, %v643_v6  ;;  %1047 = vrcp.f32 %v401_v48  ;;  %887 = vmatpush.msra.mxu2 %v827_v59  ;;  %v413_v3 = vand.u32 2147483648, %v401_v48  ;;  %vm407_vm8 = vweird.f32 %v401_v48  ;;  %v853_v6 = vld [vmem:[#allocation6 + $0xd8] sm:$0xff] }
 0x563   :  { %v630_v13 = vadd.f32 %v1038_v61, %v629_v8  ;;  %v269_v25 = vmul.f32 %v1042_v2, %v268_v18  ;;  %1049 = vrcp.f32 %v534_v54  ;;  %v411_v4 = vand.u32 2147483647, %v401_v48 }
 0x564   :  { %v645_v15 = vadd.f32 %v1040_v0, %v644_v11  ;;  %888 = vmatpush.msra.mxu2 %v826_v52  ;;  %v414_v8 = vor.u32 1.1754944e-38, %v413_v3  ;;  %v851_v11 = vld [vmem:[#allocation6 + $0xc8] sm:$0xff]  ;;  %v544_v18 = vand.u32 2147483647, %v534_v54  ;;  %v117_v52 = vadd.f32 %v1378_v63, %v1359_v43 }
 0x565   :  { %v634_v21 = vsel %vm633_vm1, %v1038_v61, %v630_v13  ;;  %v270_v28 = vadd.f32 %v1042_v2, %v269_v25  ;;  %vm412_vm12 = vcmp.eq.f32.partialorder %v411_v4, 8.507059e+37  ;;  %v848_v25 = vld [vmem:[#allocation6 + $0xb0] sm:$0xff] }
 0x566   :  { %v649_v20 = vsel %vm648_vm14, %v1040_v0, %v645_v15  ;;  %v639_v26 = vsel %vm636_vm2, %v638_v23, %v634_v21  ;;  %vm540_vm14 = vweird.f32 %v534_v54 }
 0x567   :  { %v1399_v33 = vsel %vm651_vm0, %v653_v17, %v649_v20  ;;  %v274_v32 = vsel %vm273_vm5, %v1042_v2, %v270_v28  ;;  %v658_v38 = vmul.f32 %v639_v26, %v1383_v39  ;;  %v854_v2 = vld [vmem:[#allocation6 + $0xe0] sm:$0xff]  ;;  %v546_v17 = vand.u32 2147483648, %v534_v54 }
 0x568   :  { %v656_v22 = vmul.f32 2.0, %v1399_v33  ;;  %v279_v35 = vsel %vm276_vm6, %v278_v34, %v274_v32  ;;  %v1048_v53 = vpop.eup %1047  ;;  %896 = vmatpush.msrb.mxu3 %v854_v2  ;;  %vm545_vm0 = vcmp.eq.f32.partialorder %v544_v18, 8.507059e+37  ;;  %v846_v28 = vld [vmem:[#allocation6 + $0xa0] sm:$0xff]  ;;  %v844_v32 = vld [vmem:[#allocation6 + $0x90] sm:$0xff]  ;;  %v843_v34 = vld [vmem:[#allocation6 + $0x88] sm:$0xff] }
 0x569   :  { %v403_v55 = vmul.f32 %v1048_v53, %v401_v48  ;;  %v1050_v56 = vpop.eup %1049  ;;  %vm408_vm7 = vweird.f32 %v1048_v53  ;;  %v547_v21 = vor.u32 1.1754944e-38, %v546_v17 }
 0x56a   :  { %v982_v24 = vadd.f32 -1.0, %v656_v22  ;;  %v536_v61 = vmul.f32 %v1050_v56, %v534_v54  ;;  %vm409_vm10 = vmor %vm407_vm8, %vm408_vm7  ;;  %897 = vmatpush.msrb.mxu3 %v853_v6  ;;  %vm541_vm13 = vweird.f32 %v1050_v56 }
 0x56b   :  { %v404_v40 = vsub.f32 1.0, %v403_v55  ;;  %vm542_vm15 = vmor %vm540_vm14, %vm541_vm13 }
 0x56c   :  { %v659_v27 = vmul.f32 %v982_v24, %v639_v26  ;;  %v537_v5 = vsub.f32 1.0, %v536_v61  ;;  %898 = vmatpush.msrb.mxu3 %v852_v7  ;;  %v849_v24 = vld [vmem:[#allocation6 + $0xb8] sm:$0xff]  ;;  %v847_v26 = vld [vmem:[#allocation6 + $0xa8] sm:$0xff] }
 0x56d   :  { %v405_v57 = vmul.f32 %v1048_v53, %v404_v40 }
 0x56e   :  { %661 = vrot.lane.b32.xlu0 %v659_v27, %s1156_s3  ;;  %v538_v10 = vmul.f32 %v1050_v56, %v537_v5  ;;  %899 = vmatpush.msrb.mxu3 %v851_v11 }
 0x56f   :  { %v406_v1 = vadd.f32 %v1048_v53, %v405_v57 }
 0x570   :  { %v539_v16 = vadd.f32 %v1050_v56, %v538_v10 }
 0x571   :  { %v410_v39 = vsel %vm409_vm10, %v1048_v53, %v406_v1 }
 0x572   :  { %v415_v13 = vsel %vm412_vm12, %v414_v8, %v410_v39  ;;  %v543_v19 = vsel %vm542_vm15, %v1050_v56, %v539_v16 }
 0x573   :  { %v548_v22 = vsel %vm545_vm0, %v547_v21, %v543_v19 }
 0x576   :  { %282 = vrot.lane.b32.xlu0 %v279_v35, %s1156_s3  ;;  %v842_v35 = vld [vmem:[#allocation6 + $0x80] sm:$0xff] }
 0x5e0   :  { %v662_v60 = vpop.permute.xlu0 %661 }
 0x5e1   :  { %v1410_v0 = vadd.f32 %v662_v60, %v658_v38 }
 0x5e3   :  { %1051 = vtanh.f32 %v1410_v0 }
 0x5e8   :  { %v283_v9 = vpop.permute.xlu0 %282 }
 0x5e9   :  { %v1052_v12 = vpop.eup %1051  ;;  %285 = vst.msk [vmem:[#allocation2] sm:$0xff] %vm167_vm9, %v283_v9 }
 0x5ea   :  { %418 = vst.msk [vmem:[#allocation2] sm:$0xff] %vm417_vm11, %v415_v13  ;;  %v666_v15 = vmul.f32 %v1052_v12, %v1399_v33  ;;  %v850_v33 = vld [vmem:[#allocation6 + $0xc0] sm:$0xff] }
 0x5eb   :  { %900 = vmatpush.msrb.mxu3 %v850_v33 }
 0x5ec   :  { %704 = vrot.lane.b32.xlu1 %v666_v15, %s1156_s3  ;;  %v983_v23 = vmul.f32 -1.442695, %v666_v15 }
 0x5ed   :  { %901 = vmatpush.msrb.mxu3 %v849_v24 }
 0x5ee   :  { %1053 = vpow2.f32 %v983_v23  ;;  %v864_v23 = vld [vmem:[#allocation6 + $0x130] sm:$0xff] }
 0x5ef   :  { %902 = vmatpush.msrb.mxu3 %v848_v25  ;;  %v863_v25 = vld [vmem:[#allocation6 + $0x128] sm:$0xff] }
 0x5f1   :  { %v823_v20 = vld [vmem:[#allocation2] sm:$0xff]  ;;  %903 = vmatpush.msrb.mxu3 %v847_v26 }
 0x5f2   :  { %889 = vmatmul.f32.vlgmr.msra.gmra.mxu2 %v823_v20 }
 0x5f3   :  { %904 = vmatpush.msrb.mxu3 %v846_v28 }
 0x5f4   :  { %551 = vrot.lane.b32.xlu1 %v548_v22, %s1156_s3  ;;  %v1054_v27 = vpop.eup %1053  ;;  %v865_v22 = vld [vmem:[#allocation6 + $0x138] sm:$0xff] }
 0x5f5   :  { %v670_v29 = vadd.f32 1.0, %v1054_v27  ;;  %905 = vmatpush.msrb.mxu3 %v845_v31  ;;  %921 = vmatpush.msrb.mxu0 %v865_v22  ;;  %v862_v27 = vld [vmem:[#allocation6 + $0x120] sm:$0xff] }
 0x5f7   :  { %1055 = vrcp.f32 %v670_v29  ;;  %906 = vmatpush.msrb.mxu3 %v844_v32  ;;  %v682_v46 = vand.u32 2147483648, %v670_v29  ;;  %vm676_vm2 = vweird.f32 %v670_v29  ;;  %v680_v47 = vand.u32 2147483647, %v670_v29  ;;  %922 = vmatpush.msrb.mxu0 %v864_v23 }
 0x5f9   :  { %907 = vmatpush.msrb.mxu3 %v843_v34  ;;  %v683_v49 = vor.u32 1.1754944e-38, %v682_v46  ;;  %vm681_vm4 = vcmp.eq.f32.partialorder %v680_v47, 8.507059e+37  ;;  %923 = vmatpush.msrb.mxu0 %v863_v25  ;;  %v860_v46 = vld [vmem:[#allocation6 + $0x110] sm:$0xff]  ;;  %v859_v47 = vld [vmem:[#allocation6 + $0x108] sm:$0xff] }
 0x5fb   :  { %908 = vmatpush.msrb.mxu3 %v842_v35  ;;  %924 = vmatpush.msrb.mxu0 %v862_v27 }
 0x5fd   :  { %v1056_v36 = vpop.eup %1055 }
 0x5fe   :  { %v672_v37 = vmul.f32 %v1056_v36, %v670_v29  ;;  %vm677_vm1 = vweird.f32 %v1056_v36 }
 0x5ff   :  { %vm678_vm3 = vmor %vm676_vm2, %vm677_vm1 }
 0x600   :  { %v673_v30 = vsub.f32 1.0, %v672_v37 }
 0x602   :  { %v674_v41 = vmul.f32 %v1056_v36, %v673_v30 }
 0x604   :  { %v675_v45 = vadd.f32 %v1056_v36, %v674_v41 }
 0x606   :  { %v679_v48 = vsel %vm678_vm3, %v1056_v36, %v675_v45  ;;  %v861_v45 = vld [vmem:[#allocation6 + $0x118] sm:$0xff] }
 0x607   :  { %v684_v59 = vsel %vm681_vm4, %v683_v49, %v679_v48  ;;  %925 = vmatpush.msrb.mxu0 %v861_v45  ;;  %v858_v48 = vld [vmem:[#allocation6 + $0x100] sm:$0xff] }
 0x609   :  { %926 = vmatpush.msrb.mxu0 %v860_v46 }
 0x60b   :  { %927 = vmatpush.msrb.mxu0 %v859_v47 }
 0x60d   :  { %928 = vmatpush.msrb.mxu0 %v858_v48 }
 0x65e   :  { %v705_v44 = vpop.permute.xlu1 %704 }
 0x65f   :  { %984 = vmatmul.msk.f32.vlgmr.msra.gmra.mxu0 %vm167_vm9, %v705_v44  ;;  %985 = vmatmul.msk.f32.vlgmr.msrb.gmra.mxu1 %vm167_vm9, %v705_v44 }
 0x666   :  { %v552_v50 = vpop.permute.xlu1 %551 }
 0x667   :  { %554 = vst.msk [vmem:[#allocation2 + $0x8] sm:$0xff] %vm167_vm9, %v552_v50 }
 0x668   :  { %686 = vst.msk [vmem:[#allocation2 + $0x8] sm:$0xff] %vm417_vm11, %v684_v59  ;;  %v1000_v59 = vld [vmem:[%s1441_s5] ss:$0 sm:$0xff] }
 0x66f   :  { %v824_v51 = vld [vmem:[#allocation2 + $0x8] sm:$0xff] }
 0x670   :  { %909 = vmatmul.f32.vlgmr.msrb.gmra.mxu3 %v824_v51 }
 0x675   :  { %v890_v51 = vpop.f32.mrf.mxu2 }
 0x6dc   :  { %v725_v53 = vpop.f32.mrf.mxu0  ;;  %v745_v54 = vpop.f32.mrf.mxu1 }
 0x6dd   :  { %v748_v55 = vadd.f32 %v725_v53, %v117_v52  ;;  %v749_v40 = vadd.f32 %v745_v54, %v1357_v42  ;;  %v891_v53 = vadd.f32 %v1000_v59, %v890_v51 }
 0x6df   :  { %v986_v56 = vmul.f32 -1.442695, %v748_v55  ;;  %v987_v57 = vmul.f32 -1.442695, %v749_v40 }
 0x6e1   :  { %1057 = vpow2.f32 %v986_v56 }
 0x6e2   :  { %1059 = vpow2.f32 %v987_v57 }
 0x6e7   :  { %v1058_v14 = vpop.eup %1057 }
 0x6e8   :  { %v1060_v58 = vpop.eup %1059  ;;  %v756_v38 = vadd.f32 1.0, %v1058_v14 }
 0x6e9   :  { %v757_v60 = vadd.f32 1.0, %v1060_v58 }
 0x6ea   :  { %1061 = vrcp.f32 %v756_v38  ;;  %v769_v7 = vand.u32 2147483648, %v756_v38  ;;  %vm763_vm10 = vweird.f32 %v756_v38  ;;  %v767_v9 = vand.u32 2147483647, %v756_v38 }
 0x6eb   :  { %1063 = vrcp.f32 %v757_v60  ;;  %v784_v4 = vand.u32 2147483648, %v757_v60  ;;  %v782_v42 = vand.u32 2147483647, %v757_v60  ;;  %vm778_vm7 = vweird.f32 %v757_v60 }
 0x6ec   :  { %v770_v15 = vor.u32 1.1754944e-38, %v769_v7  ;;  %vm768_vm13 = vcmp.eq.f32.partialorder %v767_v9, 8.507059e+37 }
 0x6ed   :  { %v785_v8 = vor.u32 1.1754944e-38, %v784_v4  ;;  %vm783_vm11 = vcmp.eq.f32.partialorder %v782_v42, 8.507059e+37 }
 0x6f0   :  { %v1062_v61 = vpop.eup %1061 }
 0x6f1   :  { %v1064_v62 = vpop.eup %1063  ;;  %v759_v1 = vmul.f32 %v1062_v61, %v756_v38  ;;  %vm764_vm6 = vweird.f32 %v1062_v61 }
 0x6f2   :  { %v774_v2 = vmul.f32 %v1064_v62, %v757_v60  ;;  %vm779_vm5 = vweird.f32 %v1064_v62  ;;  %vm765_vm12 = vmor %vm763_vm10, %vm764_vm6 }
 0x6f3   :  { %v760_v43 = vsub.f32 1.0, %v759_v1  ;;  %vm780_vm8 = vmor %vm778_vm7, %vm779_vm5  ;;  %v910_v52 = vpop.f32.mrf.mxu3 }
 0x6f4   :  { %v775_v63 = vsub.f32 1.0, %v774_v2  ;;  %v911_v54 = vadd.f32 %v910_v52, %v891_v53 }
 0x6f5   :  { %v761_v3 = vmul.f32 %v1062_v61, %v760_v43 }
 0x6f6   :  { %v776_v5 = vmul.f32 %v1064_v62, %v775_v63 }
 0x6f7   :  { %v762_v6 = vadd.f32 %v1062_v61, %v761_v3 }
 0x6f8   :  { %v777_v39 = vadd.f32 %v1064_v62, %v776_v5 }
 0x6f9   :  { %v766_v12 = vsel %vm765_vm12, %v1062_v61, %v762_v6 }
 0x6fa   :  { %v781_v10 = vsel %vm780_vm8, %v1064_v62, %v777_v39  ;;  %v771_v17 = vsel %vm768_vm13, %v770_v15, %v766_v12 }
 0x6fb   :  { %v786_v11 = vsel %vm783_vm11, %v785_v8, %v781_v10  ;;  %v790_v19 = vmul.f32 %v771_v17, %v1410_v0 }
 0x6fc   :  { %v788_v13 = vmul.f32 2.0, %v786_v11 }
 0x6fe   :  { %v988_v16 = vadd.f32 -1.0, %v788_v13 }
 0x700   :  { %v791_v18 = vmul.f32 %v988_v16, %v771_v17 }
 0x702   :  { %793 = vrot.lane.b32.xlu2 %v791_v18, %s1156_s3 }
 0x75c   :  { %v794_v20 = vpop.permute.xlu2 %793 }
 0x75d   :  { %v796_v21 = vadd.f32 %v794_v20, %v790_v19 }
 0x75f   :  { %1065 = vtanh.f32 %v796_v21 }
 0x765   :  { %v1066_v33 = vpop.eup %1065 }
 0x766   :  { %v798_v24 = vmul.f32 %v1066_v33, %v786_v11 }
 0x768   :  { %v989_v26 = vmul.f32 -1.442695, %v798_v24 }
 0x76a   :  { %1067 = vpow2.f32 %v989_v26 }
 0x770   :  { %v1068_v28 = vpop.eup %1067 }
 0x771   :  { %v802_v29 = vadd.f32 1.0, %v1068_v28 }
 0x773   :  { %1069 = vrcp.f32 %v802_v29  ;;  %v814_v34 = vand.u32 2147483648, %v802_v29  ;;  %v812_v36 = vand.u32 2147483647, %v802_v29  ;;  %vm808_vm15 = vweird.f32 %v802_v29 }
 0x775   :  { %v815_v30 = vor.u32 1.1754944e-38, %v814_v34  ;;  %vm813_vm1 = vcmp.eq.f32.partialorder %v812_v36, 8.507059e+37 }
 0x779   :  { %v1070_v31 = vpop.eup %1069 }
 0x77a   :  { %v804_v0 = vmul.f32 %v1070_v31, %v802_v29  ;;  %vm809_vm14 = vweird.f32 %v1070_v31 }
 0x77b   :  { %vm810_vm0 = vmor %vm808_vm15, %vm809_vm14 }
 0x77c   :  { %v805_v32 = vsub.f32 1.0, %v804_v0 }
 0x77e   :  { %v806_v35 = vmul.f32 %v1070_v31, %v805_v32 }
 0x780   :  { %v807_v37 = vadd.f32 %v1070_v31, %v806_v35 }
 0x782   :  { %v811_v41 = vsel %vm810_vm0, %v1070_v31, %v807_v37 }
 0x783   :  { %v816_v44 = vsel %vm813_vm1, %v815_v30, %v811_v41 }
 0x784   :  { %819 = vrot.lane.b32.xlu2 %v816_v44, %s1156_s3 }
 0x7de   :  { %v820_v49 = vpop.permute.xlu2 %819 }
 0x7df   :  { %822 = vst.msk [vmem:[#allocation2 + $0x10] sm:$0xff] %vm167_vm9, %v820_v49 }
 0x7e6   :  { %v825_v50 = vld [vmem:[#allocation2 + $0x10] sm:$0xff] }
 0x7e7   :  { %990 = vmatmul.msk.f32.vlgmr.msrb.gmra.mxu0 %vm167_vm9, %v825_v50 }
 0x864   :  { %v930_v55 = vpop.f32.mrf.mxu0 }
 0x865   :  { %v931_v40 = vadd.f32 %v930_v55, %v911_v54 }
 0x867   :  { %933 = vst [vmem:[#allocation8] sm:$0xff] %v931_v40 }
 0x868   :  { %944 = dma.vmem_to_hbm [thread:$0]  %s940_s30, 128, %s942_s9, [#allocation5]  }
 0x869   :  { %1147 = dma.done.wait [#allocation5], 128  }
 0x86a   :  { %1148 = vsyncadd [#allocation5], 4294967168 }
 0x86b   :  { %949 = vsyncpa [#allocation4], 1 }
 0x86c   :  { %950 = vsyncpa [#allocation7], 1 }
 0x86d   :  { %951 = vsyncpa [#allocation5], 1 }

</bundles_post_ra>
